<compile_context>
chip_gen: v7x
topology: tpu7x:2x2x1
jax: 0.10.0
libtpu: 0.0.40
codegen_flags: <defaults>
</compile_context>

<pallas_src>
import functools

import jax
import jax.numpy as jnp
from jax.experimental import pallas as pl
from jax.experimental.pallas import tpu as pltpu


def _round_up(x, m):
    return (x + m - 1) // m * m


def _chip_info():
    """(vmem_capacity_bytes, tensorcores_per_chip) with safe fallbacks."""
    try:
        vmem_cap = int(pltpu.get_tpu_info().vmem_capacity_bytes)
    except Exception:
        vmem_cap = 64 * 1024 * 1024          # conservative (v7x per-core floor)
    try:
        kind = jax.devices()[0].device_kind.lower()
    except Exception:
        kind = ""
    # v7x has 2 TensorCores per chip (and 64 MiB VMEM per core); v5e/v6e have 1.
    n_cores = 2 if ("v7" in kind or vmem_cap <= 64 * 1024 * 1024) else 1
    return vmem_cap, n_cores


def _hidden_tile_candidates(hidden, want):
    """Descending legal hidden-tile sizes: multiples of 128 dividing `hidden`,
    largest candidate <= `want`, preferring a 256-aligned start (the v6e/v7x MXU
    is 2x256x256; 128-granular tiles underfill the 2nd matmul's contraction)."""
    if hidden % 128 != 0:
        return [hidden]                      # not streamable; full-extent only
    divs = [d for d in range(128, hidden + 1, 128) if hidden % d == 0]
    want = max(128, min(want, hidden))
    start = max((d for d in divs if d <= want and d % 256 == 0), default=None)
    if start is None:
        start = max((d for d in divs if d <= want), default=divs[0])
    return [d for d in sorted(divs, reverse=True) if d <= start]


# --------------------------------------------------------------------------- #
# Kernels
# --------------------------------------------------------------------------- #
def _ffn_resident_kernel(x_ref, w1_ref, b1_ref, w2_ref, b2_ref, o_ref, *,
                         approximate_gelu):
    """Weights fully VMEM-resident; 1-D grid over row tiles."""
    h = jnp.dot(x_ref[...].astype(w1_ref.dtype), w1_ref[...],
                preferred_element_type=jnp.float32)
    h = jax.nn.gelu(h + b1_ref[...], approximate=approximate_gelu)
    y = jnp.dot(h.astype(w2_ref.dtype), w2_ref[...],
                preferred_element_type=jnp.float32)
    o_ref[...] = (y + b2_ref[...]).astype(o_ref.dtype)


def _ffn_stream_f32out_kernel(x_ref, w1_ref, b1_ref, w2_ref, b2_ref, o_ref, *,
                              approximate_gelu):
    """Hidden-streaming; f32 output — accumulate directly into the resident
    output block (no scratch)."""
    h_idx = pl.program_id(1)

    @pl.when(h_idx == 0)
    def _init():
        o_ref[...] = jnp.zeros_like(o_ref) + b2_ref[...].astype(o_ref.dtype)

    h = jnp.dot(x_ref[...].astype(w1_ref.dtype), w1_ref[...],
                preferred_element_type=jnp.float32)
    h = jax.nn.gelu(h + b1_ref[...], approximate=approximate_gelu)
    o_ref[...] += jnp.dot(h.astype(w2_ref.dtype), w2_ref[...],
                          preferred_element_type=jnp.float32)


def _ffn_stream_acc_kernel(x_ref, w1_ref, b1_ref, w2_ref, b2_ref, o_ref,
                           acc_ref, *, approximate_gelu):
    """Hidden-streaming; narrow output dtype — f32 VMEM accumulator."""
    h_idx = pl.program_id(1)

    @pl.when(h_idx == 0)
    def _init():
        acc_ref[...] = jnp.zeros_like(acc_ref)

    h = jnp.dot(x_ref[...].astype(w1_ref.dtype), w1_ref[...],
                preferred_element_type=jnp.float32)
    h = jax.nn.gelu(h + b1_ref[...], approximate=approximate_gelu)
    acc_ref[...] += jnp.dot(h.astype(w2_ref.dtype), w2_ref[...],
                            preferred_element_type=jnp.float32)

    @pl.when(h_idx == pl.num_programs(1) - 1)
    def _finalize():
        o_ref[...] = (acc_ref[...] + b2_ref[...]).astype(o_ref.dtype)


# --------------------------------------------------------------------------- #
# Wrapper
# --------------------------------------------------------------------------- #
@functools.partial(
    jax.jit,
    static_argnames=("tile_m", "tile_h", "approximate_gelu", "weights_resident"))
def feed_forward(x, w1, b1, w2, b2, *, tile_m=512, tile_h=512,
                 approximate_gelu=None, weights_resident=None):
    """gelu(x @ W1 + b1) @ W2 + b2, features on the last axis.

    W1: (dim, hidden), W2: (hidden, dim) — pre-transposed vs. torch's (out, in).
    tile_m: rows per MXU pass.  Keep >= 256 on all generations (incl. v5e);
            512 default — the VMEM back-off shrinks it only when it must.
    tile_h: hidden chunk streamed per grid step on the streaming path.
    approximate_gelu: None = auto (tanh-GELU when dim <= 512, exact erf
            otherwise — torch.nn.GELU parity); True/False to force.
    weights_resident: None = auto (resident when W1/W2 + tiles fit VMEM);
            True/False to force.
    For bf16 throughput, pass W1/W2 already in bf16 (cast once, outside); x is
    cast to the weight dtype in-kernel, biases stay full precision, accumulation
    stays f32 (hidden activations are quantized to the weight dtype).
    """
    orig_shape = x.shape
    out_dtype = x.dtype
    dim = orig_shape[-1]
    hidden = w1.shape[1]

    x2d = x.reshape(-1, dim)
    m = x2d.shape[0]

    b1_2d = b1.reshape(1, hidden)
    b2_2d = b2.reshape(1, dim)

    if approximate_gelu is None:
        # tanh-GELU routes the transcendental to the otherwise-idle EUP slot;
        # auto-enable where the erf polynomial would bind the VALU (narrow dim).
        approximate_gelu = dim <= 512

    vmem_cap, n_cores = _chip_info()
    budget = int(0.70 * vmem_cap)

    x_item = jnp.dtype(x2d.dtype).itemsize
    w1_item = jnp.dtype(w1.dtype).itemsize
    w2_item = jnp.dtype(w2.dtype).itemsize
    out_item = jnp.dtype(out_dtype).itemsize
    b1_item = jnp.dtype(b1.dtype).itemsize
    b2_item = jnp.dtype(b2.dtype).itemsize
    weight_bytes = (w1.size * w1_item + w2.size * w2_item
                    + b1.size * b1_item + b2.size * b2_item)
    need_acc = jnp.dtype(out_dtype) != jnp.dtype(jnp.float32)

    def resident_fp(tm_):
        # double-buffered weights + x/out tiles + f32 GELU intermediate (x2 temps)
        return (2 * weight_bytes
                + 2 * tm_ * dim * (x_item + out_item)
                + 2 * tm_ * hidden * 4)

    def stream_fp(tm_, th_):
        return (2 * tm_ * dim * x_item                        # x tile
                + 2 * (dim * th_ * w1_item + th_ * dim * w2_item)   # W slices
                + 2 * (th_ * b1_item + dim * b2_item)         # bias slices
                + 2 * tm_ * dim * out_item                    # out tile
                + (tm_ * dim * 4 if need_acc else 0)          # f32 accumulator
                + 2 * tm_ * th_ * 4)                          # f32 GELU interm.

    # ---- row tile --------------------------------------------------------
    tm_base = max(8, min(tile_m, _round_up(m, 8)))
    tm_base = _round_up(tm_base, 8)

    streamable = hidden % 128 == 0
    if weights_resident is None:
        resident = resident_fp(min(tm_base, 256)) <= budget
    else:
        resident = bool(weights_resident)
    if not streamable:
        resident = True          # ragged hidden: full-extent W blocks only

    flops = 4 * m * dim * hidden             # two matmuls, 2 flops / MAC
    trans = m * hidden if approximate_gelu else 0

    if resident:
        tm = tm_base
        # >= 2 row tiles so v7x's 2 TensorCores both get work (weights are
        # resident, so the extra tile is free on 1-TC chips too).
        if m >= 16:
            tm = min(tm, _round_up(pl.cdiv(m, 2), 8))
        while resident_fp(tm) > budget and tm > 8:
            tm = max(8, _round_up(tm // 2, 8))
        if resident_fp(tm) > budget and streamable and weights_resident is None:
            resident = False                 # fall back to hidden streaming

    if resident:
        grid = (pl.cdiv(m, tm),)
        bytes_accessed = int(x2d.size * x_item + weight_bytes + m * dim * out_item)
        vmem_limit = int(min(max(resident_fp(tm) * 1.25, 32 * 1024 * 1024),
                             0.92 * vmem_cap))
        out = pl.pallas_call(
            functools.partial(_ffn_resident_kernel,
                              approximate_gelu=approximate_gelu),
            out_shape=jax.ShapeDtypeStruct((m, dim), out_dtype),
            grid_spec=pltpu.PrefetchScalarGridSpec(
                num_scalar_prefetch=0,
                grid=grid,
                in_specs=[
                    pl.BlockSpec((tm, dim), lambda i: (i, 0)),       # x row tile
                    pl.BlockSpec((dim, hidden), lambda i: (0, 0)),   # W1 resident
                    pl.BlockSpec((1, hidden), lambda i: (0, 0)),     # b1 resident
                    pl.BlockSpec((hidden, dim), lambda i: (0, 0)),   # W2 resident
                    pl.BlockSpec((1, dim), lambda i: (0, 0)),        # b2 resident
                ],
                out_specs=pl.BlockSpec((tm, dim), lambda i: (i, 0)),
            ),
            compiler_params=pltpu.CompilerParams(
                dimension_semantics=("parallel",),
                vmem_limit_bytes=vmem_limit),
            cost_estimate=pl.CostEstimate(flops=flops, transcendentals=trans,
                                          bytes_accessed=bytes_accessed),
        )(x2d, w1, b1_2d, w2, b2_2d)
    else:
        tm = tm_base
        if n_cores >= 2 and m >= 16:
            # >= 2 row tiles so both v7x TensorCores get work.  (On 1-TC chips we
            # keep the largest tile: splitting rows doubles weight re-streaming.)
            tm = min(tm, _round_up(pl.cdiv(m, 2), 8))

        th_list = _hidden_tile_candidates(hidden, tile_h)
        ti, th = 0, th_list[0]
        # Back-off: shrink tile_h 512->256->128 before shrinking tm (v7x 64 MiB).
        while stream_fp(tm, th) > budget:
            if ti + 1 < len(th_list):
                ti += 1
                th = th_list[ti]
            elif tm > 8:
                tm = max(8, _round_up(tm // 2, 8))
            else:
                break

        nh = hidden // th
        n_row_tiles = pl.cdiv(m, tm)
        grid = (n_row_tiles, nh)

        def _serp(i, h):
            # Serpentine hidden index: reuse the last-used W1/W2 slice when the
            # row tile increments (saves one slice re-fetch per row tile).
            return h + (i % 2) * (nh - 1 - 2 * h)

        in_specs = [
            pl.BlockSpec((tm, dim), lambda i, h: (i, 0)),            # x resident across h
            pl.BlockSpec((dim, th), lambda i, h: (0, _serp(i, h))),  # W1 hidden slice
            pl.BlockSpec((1, th), lambda i, h: (0, _serp(i, h))),    # b1 hidden slice
            pl.BlockSpec((th, dim), lambda i, h: (_serp(i, h), 0)),  # W2 hidden slice
            pl.BlockSpec((1, dim), lambda i, h: (0, 0)),             # b2 grid-constant
        ]
        out_spec = pl.BlockSpec((tm, dim), lambda i, h: (i, 0))

        bytes_accessed = int(
            x2d.size * x_item
            + n_row_tiles * (w1.size * w1_item + w2.size * w2_item
                             + b1.size * b1_item)
            + b2.size * b2_item
            + m * dim * out_item)
        vmem_limit = int(min(max(stream_fp(tm, th) * 1.25, 32 * 1024 * 1024),
                             0.92 * vmem_cap))

        if need_acc:
            kernel = functools.partial(_ffn_stream_acc_kernel,
                                       approximate_gelu=approximate_gelu)
            scratch = [pltpu.VMEM((tm, dim), jnp.float32)]
        else:
            kernel = functools.partial(_ffn_stream_f32out_kernel,
                                       approximate_gelu=approximate_gelu)
            scratch = []

        out = pl.pallas_call(
            kernel,
            out_shape=jax.ShapeDtypeStruct((m, dim), out_dtype),
            grid_spec=pltpu.PrefetchScalarGridSpec(
                num_scalar_prefetch=0,
                grid=grid,
                in_specs=in_specs,
                out_specs=out_spec,
                scratch_shapes=scratch,
            ),
            compiler_params=pltpu.CompilerParams(
                dimension_semantics=("parallel", "arbitrary"),
                vmem_limit_bytes=vmem_limit),
            cost_estimate=pl.CostEstimate(flops=flops, transcendentals=trans,
                                          bytes_accessed=bytes_accessed),
        )(x2d, w1, b1_2d, w2, b2_2d)

    return out.reshape(orig_shape)


def init_params(key, dim, hidden_dim, dtype=jnp.float32):
    """Deterministic init mirroring nn.Linear shapes (stored pre-transposed)."""
    k1, k2, k3, k4 = jax.random.split(key, 4)
    s1 = 1.0 / jnp.sqrt(dim)
    s2 = 1.0 / jnp.sqrt(hidden_dim)
    w1 = jax.random.uniform(k1, (dim, hidden_dim), dtype, -s1, s1)
    b1 = jax.random.uniform(k2, (hidden_dim,), dtype, -s1, s1)
    w2 = jax.random.uniform(k3, (hidden_dim, dim), dtype, -s2, s2)
    b2 = jax.random.uniform(k4, (dim,), dtype, -s2, s2)
    return w1, b1, w2, b2


if __name__ == "__main__":
    key = jax.random.PRNGKey(0)
    batch, seq, dim, hidden_dim = 2, 8, 128, 256     # lane-aligned small shapes

    kx, kp = jax.random.split(key)
    x = jax.random.normal(kx, (batch, seq, dim), jnp.float32)
    w1, b1, w2, b2 = init_params(kp, dim, hidden_dim)

    ref_tanh = jax.nn.gelu(x @ w1 + b1, approximate=True) @ w2 + b2
    ref_erf = jax.nn.gelu(x @ w1 + b1, approximate=False) @ w2 + b2

    # 1) Default: weights-resident fast path + auto tanh-GELU (dim <= 512).
    out = jax.block_until_ready(feed_forward(x, w1, b1, w2, b2))
    assert out.shape == x.shape and out.dtype == x.dtype
    assert jnp.allclose(out, ref_tanh, atol=1e-4, rtol=1e-4)

    # 2) Exact erf-GELU (torch.nn.GELU parity), forced hidden-streaming path —
    #    exercises the accumulate-into-output kernel + serpentine index maps.
    out_s = jax.block_until_ready(
        feed_forward(x, w1, b1, w2, b2, approximate_gelu=False,
                     weights_resident=False, tile_h=128))
    assert jnp.allclose(out_s, ref_erf, atol=1e-4, rtol=1e-4)

    # 3) Ragged row count (m % tile_m != 0) — edge block masked in-kernel;
    #    no wrapper-side pad/slice HBM passes.
    x_odd = x.reshape(-1, dim)[:9]
    out_odd = jax.block_until_ready(feed_forward(x_odd, w1, b1, w2, b2))
    assert jnp.allclose(out_odd, ref_tanh.reshape(-1, dim)[:9],
                        atol=1e-4, rtol=1e-4)

    # 4) bf16 weights pre-cast ONCE outside (no per-call weight cast); f32 x is
    #    cast in-kernel, accumulation stays f32.
    w1b, w2b = w1.astype(jnp.bfloat16), w2.astype(jnp.bfloat16)
    out_bf = jax.block_until_ready(feed_forward(x, w1b, b1, w2b, b2))
    assert jnp.allclose(out_bf, ref_tanh, atol=5e-2, rtol=5e-2)

    # 5) Fully-bf16, forced streaming — covers the f32-scratch-accumulator kernel
    #    (output dtype is bf16).
    x_bf = x.astype(jnp.bfloat16)
    out_bf2 = jax.block_until_ready(
        feed_forward(x_bf, w1b, b1, w2b, b2, weights_resident=False, tile_h=128))
    assert out_bf2.dtype == jnp.bfloat16
    assert jnp.allclose(out_bf2.astype(jnp.float32), ref_tanh,
                        atol=5e-2, rtol=5e-2)

    print("KERNEL_OK")
</pallas_src>

<mosaic_0001>
module attributes {stable_mosaic.version = 11 : i64} {
  func.func @_ffn_resident_kernel(%arg0: i32, %arg1: memref<8x128xf32, #tpu.memory_space<vmem>>, %arg2: memref<128x256xf32, #tpu.memory_space<vmem>>, %arg3: memref<1x256xf32, #tpu.memory_space<vmem>>, %arg4: memref<256x128xf32, #tpu.memory_space<vmem>>, %arg5: memref<1x128xf32, #tpu.memory_space<vmem>>, %arg6: memref<8x128xf32, #tpu.memory_space<vmem>>) attributes {dimension_semantics = [#tpu.dimension_semantics<parallel>], iteration_bounds = array<i64: 2>, scalar_prefetch = 0 : i64, scratch_operands = 0 : i64, tpu.core_type = #tpu.core_type<tc>, window_params = [{transform_indices = @transform_0, window_bounds = array<i64: 8, 128>}, {pipeline_mode = #tpu.pipeline_mode<synchronous>, transform_indices = @transform_1, window_bounds = array<i64: 128, 256>}, {pipeline_mode = #tpu.pipeline_mode<synchronous>, transform_indices = @transform_2, window_bounds = array<i64: 1, 256>}, {pipeline_mode = #tpu.pipeline_mode<synchronous>, transform_indices = @transform_3, window_bounds = array<i64: 256, 128>}, {pipeline_mode = #tpu.pipeline_mode<synchronous>, transform_indices = @transform_4, window_bounds = array<i64: 1, 128>}, {transform_indices = @transform_5, window_bounds = array<i64: 8, 128>}]} {
    %c0 = arith.constant 0 : index
    %c0_0 = arith.constant 0 : index
    %0 = vector.load %arg1[%c0, %c0_0] : memref<8x128xf32, #tpu.memory_space<vmem>>, vector<8x128xf32>
    %c0_1 = arith.constant 0 : index
    %c0_2 = arith.constant 0 : index
    %1 = vector.load %arg2[%c0_1, %c0_2] : memref<128x256xf32, #tpu.memory_space<vmem>>, vector<128x256xf32>
    %cst = arith.constant dense<0.000000e+00> : vector<8x256xf32>
    %2 = tpu.matmul %0, %1, %cst {dimension_numbers = #tpu.dot_dimension_numbers<[1], [0], [0], [1], [0, 0, 1, 1], [], []>} : vector<8x128xf32>, vector<128x256xf32>, vector<8x256xf32> -> vector<8x256xf32>
    %c0_3 = arith.constant 0 : index
    %c0_4 = arith.constant 0 : index
    %3 = vector.load %arg3[%c0_3, %c0_4] : memref<1x256xf32, #tpu.memory_space<vmem>>, vector<1x256xf32>
    %4 = vector.broadcast %3 : vector<1x256xf32> to vector<8x256xf32>
    %5 = arith.addf %2, %4 : vector<8x256xf32>
    %6 = arith.mulf %5, %5 : vector<8x256xf32>
    %7 = arith.mulf %5, %6 : vector<8x256xf32>
    %cst_5 = arith.constant 4.471500e-02 : f32
    %8 = vector.broadcast %cst_5 : f32 to vector<8x256xf32>
    %9 = arith.mulf %8, %7 : vector<8x256xf32>
    %10 = arith.addf %5, %9 : vector<8x256xf32>
    %cst_6 = arith.constant 0.797884583 : f32
    %11 = vector.broadcast %cst_6 : f32 to vector<8x256xf32>
    %12 = arith.mulf %11, %10 : vector<8x256xf32>
    %13 = math.tanh %12 : vector<8x256xf32>
    %cst_7 = arith.constant 1.000000e+00 : f32
    %14 = vector.broadcast %cst_7 : f32 to vector<8x256xf32>
    %15 = arith.addf %14, %13 : vector<8x256xf32>
    %cst_8 = arith.constant 5.000000e-01 : f32
    %16 = vector.broadcast %cst_8 : f32 to vector<8x256xf32>
    %17 = arith.mulf %16, %15 : vector<8x256xf32>
    %18 = arith.mulf %5, %17 : vector<8x256xf32>
    %c0_9 = arith.constant 0 : index
    %c0_10 = arith.constant 0 : index
    %19 = vector.load %arg4[%c0_9, %c0_10] : memref<256x128xf32, #tpu.memory_space<vmem>>, vector<256x128xf32>
    %cst_11 = arith.constant dense<0.000000e+00> : vector<8x128xf32>
    %20 = tpu.matmul %18, %19, %cst_11 {dimension_numbers = #tpu.dot_dimension_numbers<[1], [0], [0], [1], [0, 0, 1, 1], [], []>} : vector<8x256xf32>, vector<256x128xf32>, vector<8x128xf32> -> vector<8x128xf32>
    %c0_12 = arith.constant 0 : index
    %c0_13 = arith.constant 0 : index
    %21 = vector.load %arg5[%c0_12, %c0_13] : memref<1x128xf32, #tpu.memory_space<vmem>>, vector<1x128xf32>
    %22 = vector.broadcast %21 : vector<1x128xf32> to vector<8x128xf32>
    %23 = arith.addf %20, %22 : vector<8x128xf32>
    %c0_14 = arith.constant 0 : index
    %c0_15 = arith.constant 0 : index
    %24 = vector.load %arg6[%c0_14, %c0_15] : memref<8x128xf32, #tpu.memory_space<vmem>>, vector<8x128xf32>
    tpu.vector_store %arg6[%c0_14, %c0_15], %23 {strides = array<i32>} : memref<8x128xf32, #tpu.memory_space<vmem>>, vector<8x128xf32>,
    return
  }
  func.func @transform_0(%arg0: i32) -> (i32, i32) {
    %c0_i32 = arith.constant 0 : i32
    %c0_i32_0 = arith.constant 0 : i32
    return %arg0, %c0_i32 : i32, i32
  }
  func.func @transform_1(%arg0: i32) -> (i32, i32) {
    %c0_i32 = arith.constant 0 : i32
    %c0_i32_0 = arith.constant 0 : i32
    %c0_i32_1 = arith.constant 0 : i32
    return %c0_i32, %c0_i32_0 : i32, i32
  }
  func.func @transform_2(%arg0: i32) -> (i32, i32) {
    %c0_i32 = arith.constant 0 : i32
    %c0_i32_0 = arith.constant 0 : i32
    %c0_i32_1 = arith.constant 0 : i32
    return %c0_i32, %c0_i32_0 : i32, i32
  }
  func.func @transform_3(%arg0: i32) -> (i32, i32) {
    %c0_i32 = arith.constant 0 : i32
    %c0_i32_0 = arith.constant 0 : i32
    %c0_i32_1 = arith.constant 0 : i32
    return %c0_i32, %c0_i32_0 : i32, i32
  }
  func.func @transform_4(%arg0: i32) -> (i32, i32) {
    %c0_i32 = arith.constant 0 : i32
    %c0_i32_0 = arith.constant 0 : i32
    %c0_i32_1 = arith.constant 0 : i32
    return %c0_i32, %c0_i32_0 : i32, i32
  }
  func.func @transform_5(%arg0: i32) -> (i32, i32) {
    %c0_i32 = arith.constant 0 : i32
    %c0_i32_0 = arith.constant 0 : i32
    return %arg0, %c0_i32 : i32, i32
  }
}

</mosaic_0001>

<bundles_post_ra>
// kernel: feed_forward.1
= control target key start
LH: loop header
LB: loop body
LE: loop exit
PB: predicated region body
PF: predicated region fallthrough
CT: control target
= control target key end

     0   :  { %10 = vsyncpa [#allocation3], 0  ;;  %s1247_s0 = inlined_call_operand.hbm [shape: f32[16,128], index: 0, kind: input, shape index: {}]   ;;  %s1248_s1 = inlined_call_operand.hbm [shape: f32[128,256], index: 1, kind: input, shape index: {}]   ;;  %s1249_s2 = inlined_call_operand.vmem [shape: f32[1,256], index: 2, kind: input, shape index: {}]   ;;  %s1250_s3 = inlined_call_operand.hbm [shape: f32[256,128], index: 3, kind: input, shape index: {}]   ;;  %s1251_s4 = inlined_call_operand.vmem [shape: f32[1,128], index: 4, kind: input, shape index: {}]   ;;  %s1252_s5 = inlined_call_operand.hbm [shape: f32[16,128], index: 5, kind: output, shape index: {}]  }
   0x1   :  { %12 = vsyncpa [#allocation3 + $0x1], 0 }
   0x2   :  { %13 = vsyncpa [#allocation6], 0 }
   0x3   :  { %14 = vsyncpa [#allocation4], 0 }
   0x4   :  { %16 = vsyncpa [#allocation4 + $0x1], 0  ;;  %s1005_s18 = smov 0   ;;  %s1007_s19 = smov 0  }
   0x5   :  { %s1009_s20 = smov 0   ;;  %s1011_s21 = smov 0  }
   0x6 LB: > { %s1026_s22 = sadd.s32 4294967295, %s964_s21   ;;  %s616_s23 = sadd.s32 4294967294, %s964_s21   ;;  %s964_s21 = sphi %s1011_s21, %s1272_s21   ;;  %s960_s20 = sphi %s1009_s20, %s1271_s20   ;;  %s956_s19 = sphi %s1007_s19, %s1270_s19   ;;  %s952_s18 = sphi %s1005_s18, %s1269_s18  }
   0x7   : > { %p42_p0 = scmp.ne.s32.totalorder %s956_s19, %s952_s18  ;;  %p1253_p1 = scmp.eq.s32.totalorder %s1026_s22, 0 }
   0x8   : > { %p156_p3 = scmp.eq.s32.totalorder %s616_s23, 1  ;;  %p617_p5 = scmp.ge.s32.totalorder %s964_s21, 1 }
   0x9   : > { %p1035_p4 = por %p1253_p1, %p42_p0  ;;  %p163_p7 = scmp.lt.s32.totalorder %s964_s21, 3 }
   0xa   : > { %p1040_p6 = por %p156_p3, %p42_p0  ;;  %s966_s27 = smov [#allocation5]  }
   0xb   : > { %s1256_s24 = scalar_select %p1035_p4, 1, 0 }
   0xc   : > { %s1257_s25 = scalar_select %p1040_p6, 1, 0 }
   0xd   : > { %p1045_p8 = pnand %p617_p5, %p163_p7  ;;  %s175_s28 = sshll.u32 %s966_s27, 4  ;;  %s1049_s28 = int_to_ptr.vmem [resolvable:$true] %s175_s28 }
   0xe   : > { %s967_s30 = smov [#allocation7]   ;;  %s808_s9 = scalar_lea.hbm %s1248_s1, 4096 }
   0xf   : > { %p744_p9 = pneg %p1045_p8  ;;  %s191_s6 = sshll.u32 %s967_s30, 4  ;;  %s1060_s6 = int_to_ptr.vmem [resolvable:$true] %s191_s6 }
  0x10   : > { %p809_p12 = scmp.ne.s32.totalorder %s1248_s1, %s808_s9  ;;  %p815_p5 = scmp.lt.u32.totalorder %s808_s9, %s1248_s1 }
  0x11   : > { %p1056_p11 = pnand %p744_p9, %p1253_p1 }
  0x13   : > { %p810_p13 = pneg %p1056_p11 }
  0x15   : > { %p811_p0 = pnand %p810_p13, %p809_p12 }
  0x17   : > { %p812_p3 = pneg %p811_p0 }
  0x19   : > { %p817_p7 = pnand %p815_p5, %p812_p3 }
  0x1b   : > { %820 = shalt.err (!%p817_p7)
}
  0x1c   : > { %s821_s14 = scalar_lea.vmem %s1049_s28, 4096  ;;  %p829_p2 = scmp.lt.s32.totalorder %s1049_s28, %s1049_s28 }
  0x1d   : > { %p822_p9 = scmp.ne.s32.totalorder %s1049_s28, %s821_s14  ;;  %p830_p12 = scmp.lt.s32.totalorder %s821_s14, %s821_s14 }
  0x1f   : > { %p824_p10 = pnand %p822_p9, %p810_p13  ;;  %p831_p0 = por %p830_p12, %p829_p2 }
  0x21   : > { %p825_p1 = pneg %p824_p10 }
  0x23   : > { %p832_p6 = pnand %p831_p0, %p825_p1 }
  0x25   : > { %835 = shalt.err (!%p832_p6)
}
  0x26   : > { %s968_s15 = smov 256   ;;  %s969_s16 = smov 16  }
  0x27   : > { %747 = dma.hbm_to_vmem [thread:$0]  (!%p1056_p11), %s1248_s1, 4096, %s1049_s28, [#allocation6], %s968_s15, %s968_s15, %s969_s16  }
  0x28   : > { %s836_s7 = scalar_lea.hbm %s1250_s3, 4096 }
  0x29   : > { %p837_p2 = scmp.ne.s32.totalorder %s1250_s3, %s836_s7  ;;  %p843_p10 = scmp.lt.u32.totalorder %s836_s7, %s1250_s3 }
  0x2b   : > { %p839_p1 = pnand %p837_p2, %p810_p13 }
  0x2d   : > { %p840_p6 = pneg %p839_p1 }
  0x2f   : > { %p845_p3 = pnand %p843_p10, %p840_p6 }
  0x31   : > { %848 = shalt.err (!%p845_p3)
}
  0x32   : > { %s849_s28 = scalar_lea.vmem %s1060_s6, 4096  ;;  %p857_p12 = scmp.lt.s32.totalorder %s1060_s6, %s1060_s6 }
  0x33   : > { %p850_p5 = scmp.ne.s32.totalorder %s1060_s6, %s849_s28  ;;  %p858_p0 = scmp.lt.s32.totalorder %s849_s28, %s849_s28 }
  0x35   : > { %p852_p7 = pnand %p850_p5, %p810_p13  ;;  %p859_p2 = por %p858_p0, %p857_p12 }
  0x37   : > { %p853_p9 = pneg %p852_p7 }
  0x39   : > { %p860_p1 = pnand %p859_p2, %p853_p9 }
  0x3b   : > { %863 = shalt.err (!%p860_p1)
}
  0x3c   : > { %s970_s12 = smov 128   ;;  %s971_s13 = smov 8  }
  0x3d   : > { %750 = dma.hbm_to_vmem [thread:$0]  (!%p1056_p11), %s1250_s3, 4096, %s1060_s6, [#allocation6], %s970_s12, %s970_s12, %s971_s13  }
  0x3e   : > { %s1115_s16 = sadd.s32 1, %s964_s21   ;;  %s29_s23 = sadd.s32 1, %s960_s20 }
  0x3f   : > { %s26_s17 = ssub.s32 %s964_s21, %s1115_s16  ;;  %p36_p6 = scmp.ne.s32.totalorder %s960_s20, %s956_s19 }
  0x40   : > { %p27_p13 = scmp.eq.s32.totalorder %s26_s17, 0  ;;  %p37_p10 = scmp.eq.s32.totalorder %s964_s21, 0 }
  0x41   : > { %p1260_p5 = scmp.eq.s32.totalorder %s1026_s22, 1  ;;  %p761_p9 = scmp.lt.s32.totalorder %s964_s21, 2 }
  0x42   : > { %s1124_s27 = scalar_select %p27_p13, %s960_s20, %s29_s23  }
  0x43   : > { %p38_p3 = por %p37_p10, %p36_p6  ;;  %p1128_p7 = por %p1260_p5, %p36_p6 }
  0x44   : > { %s208_s29 = sand.u32 1, %s960_s20   ;;  %s622_s6 = sshll.u32 %s964_s21, 7 }
  0x45   : > { %s1261_s30 = scalar_select %p1128_p7, 1, 0 }
  0x46   : > { %s621_s7 = sshll.u32 %s208_s29, 3  ;;  %s1138_s10 = scalar_lea.hbm %s1247_s0, %s622_s6 }
  0x47   : > { %s212_s11 = scalar_lea.vmem [#allocation2], %s621_s7  ;;  %p1142_p11 = pnand %p761_p9, %p38_p3 }
  0x48   : > { %s219_s28 = sshll.u32 %s212_s11, 4  ;;  %s209_s13 = scalar_lea.sflag [#allocation3], %s208_s29  ;;  %s1140_s28 = int_to_ptr.vmem [resolvable:$true] %s219_s28 }
  0x49   : > { %s864_s14 = scalar_lea.hbm %s1138_s10, 128  ;;  %p866_p0 = pneg %p1142_p11 }
  0x4a   : > { %p865_p12 = scmp.ne.s32.totalorder %s1138_s10, %s864_s14  ;;  %s869_s23 = scalar_lea.hbm %s1247_s0, 256 }
  0x4b   : > { %p870_p13 = scmp.lt.u32.totalorder %s1138_s10, %s1247_s0  ;;  %p871_p6 = scmp.lt.u32.totalorder %s869_s23, %s864_s14 }
  0x4c   : > { %p867_p2 = pnand %p866_p0, %p865_p12  ;;  %p873_p3 = scmp.lt.u32.totalorder %s864_s14, %s1138_s10 }
  0x4d   : > { %p872_p10 = por %p871_p6, %p870_p13 }
  0x4e   : > { %p868_p1 = pneg %p867_p2 }
  0x4f   : > { %p874_p5 = por %p873_p3, %p872_p10 }
  0x51   : > { %p875_p9 = pnand %p874_p5, %p868_p1 }
  0x53   : > { %878 = shalt.err (!%p875_p9)
}
  0x54   : > { %s879_s29 = scalar_lea.vmem %s1140_s28, 128  ;;  %s972_s8 = smov [#allocation2]  }
  0x55   : > { %p880_p12 = scmp.ne.s32.totalorder %s1140_s28, %s879_s29  ;;  %s884_s9 = sshll.u32 %s972_s8, 4  ;;  %s885_s9 = int_to_ptr.vmem [resolvable:$false] %s884_s9 }
  0x56   : > { %s886_s11 = scalar_lea.vmem %s885_s9, 256  ;;  %p887_p4 = scmp.lt.s32.totalorder %s1140_s28, %s885_s9 }
  0x57   : > { %p882_p2 = pnand %p880_p12, %p866_p0  ;;  %p888_p13 = scmp.lt.s32.totalorder %s886_s11, %s879_s29 }
  0x59   : > { %p883_p7 = pneg %p882_p2  ;;  %p889_p6 = por %p888_p13, %p887_p4 }
  0x5b   : > { %p890_p10 = pnand %p889_p6, %p883_p7 }
  0x5d   : > { %893 = shalt.err (!%p890_p10)
}
  0x5e   : > { %754 = dma.hbm_to_vmem [thread:$0]  (!%p1142_p11), %s1138_s10, 128, %s1140_s28, %s209_s13  }
  0x5f   : > { %228 = sbr.rel (%p1045_p8) target bundleno = 615 (0x267), region = 40  ;;  %s1174_s14 = sand.u32 (!%p1045_p8), 1, %s956_s19  }
  0x60   : > { %s624_s15 = sshll.u32 (!%p1045_p8), %s1174_s14, 3  ;;  %s231_s17 = scalar_lea.sflag (!%p1045_p8), [#allocation3], %s1174_s14 }
  0x61   : > { %s1180_s23 = scalar_lea.vmem (!%p1045_p8), [#allocation2], %s624_s15  ;;  %p1263_p4 = scmp.ne.s32.totalorder (!%p1045_p8), %s1256_s24, 0 }
  0x66   : > { %939 = dma.done.wait (%p1263_p4), %s231_s17, 128  }
  0x67   : > { %941 = vsyncadd (%p1263_p4), %s231_s17, 4294967168  ;;  %p1264_p7 = scmp.eq.s32.totalorder %s1026_s22, 0 }
  0x69   : > { %943 = dma.done.wait (%p1264_p7), [#allocation6], 8192   ;;  %p1265_p8 = pmov %p1264_p7 }
  0x6a   : > { %v973_v0 = vmov 0.0   ;;  %v271_v1 = vld [vmem:[#allocation5 + $0x8] sm:$0xff]  ;;  %v273_v2 = vld [vmem:[#allocation5 + $0x18] sm:$0xff]  ;;  %v270_v3 = vld [vmem:[#allocation5] sm:$0xff]  ;;  %s630_s12 = sshll.u32 %s1026_s22, 7  ;;  %s268_s13 = scalar_lea.vmem [#allocation8], %s624_s15 }
  0x6b   : > { %945 = vsyncadd (%p1265_p8), [#allocation6], 4294959104  ;;  %378 = vmatprep.mubr.f32.mxu0 %v973_v0  ;;  %v668_v4 = vpack.c.bf16 %v273_v2, %v271_v1  ;;  %v272_v5 = vld [vmem:[#allocation5 + $0x10] sm:$0xff]  ;;  %v275_v6 = vld [vmem:[#allocation5 + $0x28] sm:$0xff]  ;;  %s527_s7 = sshll.u32 %s268_s13, 4  ;;  %s1203_s8 = scalar_lea.hbm %s1252_s5, %s630_s12  ;;  %s1205_s7 = int_to_ptr.vmem [resolvable:$true] %s527_s7 }
  0x6c   : > { %v277_v7 = vld [vmem:[#allocation5 + $0x38] sm:$0xff]  ;;  %v670_v8 = vpack.c.bf16 %v272_v5, %v270_v3  ;;  %v274_v10 = vld [vmem:[#allocation5 + $0x20] sm:$0xff]  ;;  %v276_v11 = vld [vmem:[#allocation5 + $0x30] sm:$0xff]  ;;  %s514_s9 = scalar_lea.sflag [#allocation4], %s1174_s14  ;;  %s894_s11 = scalar_lea.vmem %s1205_s7, 128 }
  0x6d   : > { %v672_v9 = vpack.c.bf16 %v277_v7, %v275_v6  ;;  %v279_v12 = vld [vmem:[#allocation5 + $0x48] sm:$0xff]  ;;  %669 = vmatprep.subr.bf16.mxu0 %v668_v4  ;;  %v281_v13 = vld [vmem:[#allocation5 + $0x58] sm:$0xff]  ;;  %v674_v14 = vpack.c.bf16 %v276_v11, %v274_v10  ;;  %v278_v16 = vld [vmem:[#allocation5 + $0x40] sm:$0xff]  ;;  %p895_p11 = scmp.ne.s32.totalorder %s1205_s7, %s894_s11  ;;  %p1266_p0 = scmp.ne.s32.totalorder %s1261_s30, 0 }
  0x6e   : > { %671 = vmatpush1.bf16.msra.mxu0 %v670_v8  ;;  %v676_v15 = vpack.c.bf16 %v281_v13, %v279_v12  ;;  %v280_v17 = vld [vmem:[#allocation5 + $0x50] sm:$0xff]  ;;  %v283_v18 = vld [vmem:[#allocation5 + $0x68] sm:$0xff]  ;;  %v285_v19 = vld [vmem:[#allocation5 + $0x78] sm:$0xff]  ;;  %s974_s22 = smov [#allocation8]  }
  0x6f   : > { %673 = vmatprep.subr.bf16.mxu0 %v672_v9  ;;  %v678_v20 = vpack.c.bf16 %v280_v17, %v278_v16  ;;  %v680_v21 = vpack.c.bf16 %v285_v19, %v283_v18  ;;  %v282_v22 = vld [vmem:[#allocation5 + $0x60] sm:$0xff]  ;;  %v284_v23 = vld [vmem:[#allocation5 + $0x70] sm:$0xff]  ;;  %v287_v24 = vld [vmem:[#allocation5 + $0x88] sm:$0xff]  ;;  %p896_p1 = pnand %p895_p11, %p1266_p0  ;;  %s898_s15 = sshll.u32 %s974_s22, 4  ;;  %s899_s15 = int_to_ptr.vmem [resolvable:$false] %s898_s15 }
  0x70   : > { %v289_v25 = vld [vmem:[#allocation5 + $0x98] sm:$0xff]  ;;  %v682_v26 = vpack.c.bf16 %v284_v23, %v282_v22  ;;  %v286_v28 = vld [vmem:[#allocation5 + $0x80] sm:$0xff]  ;;  %v288_v29 = vld [vmem:[#allocation5 + $0x90] sm:$0xff]  ;;  %s900_s17 = scalar_lea.vmem %s899_s15, 256  ;;  %p901_p5 = scmp.lt.s32.totalorder %s1205_s7, %s899_s15 }
  0x71   : > { %v684_v27 = vpack.c.bf16 %v289_v25, %v287_v24  ;;  %v291_v30 = vld [vmem:[#allocation5 + $0xa8] sm:$0xff]  ;;  %v293_v31 = vld [vmem:[#allocation5 + $0xb8] sm:$0xff]  ;;  %v686_v32 = vpack.c.bf16 %v288_v29, %v286_v28  ;;  %v290_v34 = vld [vmem:[#allocation5 + $0xa0] sm:$0xff]  ;;  %p897_p3 = pneg %p896_p1  ;;  %p902_p9 = scmp.lt.s32.totalorder %s900_s17, %s894_s11 }
  0x72   : > { %675 = vmatpush1.bf16.msra.mxu0 %v674_v14  ;;  %v688_v33 = vpack.c.bf16 %v293_v31, %v291_v30  ;;  %v292_v35 = vld [vmem:[#allocation5 + $0xb0] sm:$0xff]  ;;  %v295_v36 = vld [vmem:[#allocation5 + $0xc8] sm:$0xff]  ;;  %v297_v37 = vld [vmem:[#allocation5 + $0xd8] sm:$0xff] }
  0x73   : > { %677 = vmatprep.subr.bf16.mxu0 %v676_v15  ;;  %v690_v38 = vpack.c.bf16 %v292_v35, %v290_v34  ;;  %v692_v39 = vpack.c.bf16 %v297_v37, %v295_v36  ;;  %v294_v40 = vld [vmem:[#allocation5 + $0xc0] sm:$0xff]  ;;  %v296_v41 = vld [vmem:[#allocation5 + $0xd0] sm:$0xff]  ;;  %v299_v42 = vld [vmem:[#allocation5 + $0xe8] sm:$0xff]  ;;  %v304_v34 = vlaneseq  ;;  %p903_p12 = por %p902_p9, %p901_p5 }
  0x74   : > { %v301_v43 = vld [vmem:[#allocation5 + $0xf8] sm:$0xff]  ;;  %v694_v44 = vpack.c.bf16 %v296_v41, %v294_v40  ;;  %v298_v46 = vld [vmem:[#allocation5 + $0xe0] sm:$0xff]  ;;  %v300_v47 = vld [vmem:[#allocation5 + $0xf0] sm:$0xff] }
  0x75   : > { %v696_v45 = vpack.c.bf16 %v301_v43, %v299_v42  ;;  %v698_v48 = vpack.c.bf16 %v300_v47, %v298_v46  ;;  %v269_v49 = vld [vmem:[%s1180_s23] sm:$0xff]  ;;  %v419_v50 = vld [vmem:[#allocation7 + $0x80] sm:$0xff]  ;;  %v420_v51 = vld [vmem:[#allocation7 + $0x88] sm:$0xff]  ;;  %v305_v35 = vshrl.u32 %v304_v34, 7  ;;  %p904_p2 = pnand %p903_p12, %p897_p3 }
  0x76   : > { %679 = vmatpush1.bf16.msra.mxu0 %v678_v20  ;;  %v700_v52 = vpack.c.bf16 %v420_v51, %v419_v50  ;;  %v403_v53 = vld [vmem:[#allocation7] sm:$0xff]  ;;  %v404_v54 = vld [vmem:[#allocation7 + $0x8] sm:$0xff]  ;;  %v421_v56 = vld [vmem:[#allocation7 + $0x90] sm:$0xff] }
  0x77   : > { %681 = vmatprep.subr.bf16.mxu0 %v680_v21  ;;  %v702_v55 = vpack.c.bf16 %v404_v54, %v403_v53  ;;  %v422_v57 = vld [vmem:[#allocation7 + $0x98] sm:$0xff]  ;;  %v405_v59 = vld [vmem:[#allocation7 + $0x10] sm:$0xff]  ;;  %v423_v62 = vld [vmem:[#allocation7 + $0xa0] sm:$0xff]  ;;  %v306_v36 = vsub.s32 0, %v305_v35 }
  0x78   : > { %701 = vmatprep.subr.bf16.mxu1 %v700_v52  ;;  %v704_v58 = vpack.c.bf16 %v422_v57, %v421_v56  ;;  %v406_v60 = vld [vmem:[#allocation7 + $0x18] sm:$0xff]  ;;  %v424_v63 = vld [vmem:[#allocation7 + $0xa8] sm:$0xff]  ;;  %v407_v1 = vld [vmem:[#allocation7 + $0x20] sm:$0xff] }
  0x79   : > { %703 = vmatpush3.bf16.msra.mxu1 %v702_v55  ;;  %v706_v61 = vpack.c.bf16 %v406_v60, %v405_v59  ;;  %v708_v0 = vpack.c.bf16 %v424_v63, %v423_v62  ;;  %v408_v2 = vld [vmem:[#allocation7 + $0x28] sm:$0xff]  ;;  %v425_v4 = vld [vmem:[#allocation7 + $0xb0] sm:$0xff]  ;;  %v426_v5 = vld [vmem:[#allocation7 + $0xb8] sm:$0xff] }
  0x7a   : > { %683 = vmatpush1.bf16.msra.mxu0 %v682_v26  ;;  %705 = vmatprep.subr.bf16.mxu1 %v704_v58  ;;  %v710_v3 = vpack.c.bf16 %v408_v2, %v407_v1  ;;  %v712_v6 = vpack.c.bf16 %v426_v5, %v425_v4  ;;  %v409_v7 = vld [vmem:[#allocation7 + $0x30] sm:$0xff]  ;;  %v410_v8 = vld [vmem:[#allocation7 + $0x38] sm:$0xff]  ;;  %v427_v10 = vld [vmem:[#allocation7 + $0xc0] sm:$0xff] }
  0x7b   : > { %685 = vmatprep.subr.bf16.mxu0 %v684_v27  ;;  %v714_v9 = vpack.c.bf16 %v410_v8, %v409_v7  ;;  %v428_v11 = vld [vmem:[#allocation7 + $0xc8] sm:$0xff]  ;;  %v411_v12 = vld [vmem:[#allocation7 + $0x40] sm:$0xff]  ;;  %v429_v15 = vld [vmem:[#allocation7 + $0xd0] sm:$0xff] }
  0x7c   : > { %v716_v13 = vpack.c.bf16 %v428_v11, %v427_v10  ;;  %v412_v14 = vld [vmem:[#allocation7 + $0x48] sm:$0xff]  ;;  %v430_v16 = vld [vmem:[#allocation7 + $0xd8] sm:$0xff]  ;;  %v413_v19 = vld [vmem:[#allocation7 + $0x50] sm:$0xff] }
  0x7d   : > { %707 = vmatpush3.bf16.msra.mxu1 %v706_v61  ;;  %v718_v17 = vpack.c.bf16 %v412_v14, %v411_v12  ;;  %v720_v18 = vpack.c.bf16 %v430_v16, %v429_v15  ;;  %v414_v20 = vld [vmem:[#allocation7 + $0x58] sm:$0xff]  ;;  %v431_v21 = vld [vmem:[#allocation7 + $0xe0] sm:$0xff]  ;;  %v432_v22 = vld [vmem:[#allocation7 + $0xe8] sm:$0xff] }
  0x7e   : > { %687 = vmatpush1.bf16.msra.mxu0 %v686_v32  ;;  %709 = vmatprep.subr.bf16.mxu1 %v708_v0  ;;  %v722_v23 = vpack.c.bf16 %v414_v20, %v413_v19  ;;  %v724_v24 = vpack.c.bf16 %v432_v22, %v431_v21  ;;  %v415_v25 = vld [vmem:[#allocation7 + $0x60] sm:$0xff]  ;;  %v416_v26 = vld [vmem:[#allocation7 + $0x68] sm:$0xff]  ;;  %v433_v27 = vld [vmem:[#allocation7 + $0xf0] sm:$0xff] }
  0x7f   : > { %689 = vmatprep.subr.bf16.mxu0 %v688_v33  ;;  %v434_v28 = vld [vmem:[#allocation7 + $0xf8] sm:$0xff]  ;;  %v726_v29 = vpack.c.bf16 %v416_v26, %v415_v25  ;;  %v417_v31 = vld [vmem:[#allocation7 + $0x70] sm:$0xff] }
  0x80   : > { %v728_v30 = vpack.c.bf16 %v434_v28, %v433_v27  ;;  %v418_v32 = vld [vmem:[#allocation7 + $0x78] sm:$0xff]  ;;  %v302_v37 = vld [vmem:[%s1249_s2] sm:$0x3] }
  0x81   : > { %711 = vmatpush3.bf16.msra.mxu1 %v710_v3  ;;  %v730_v33 = vpack.c.bf16 %v418_v32, %v417_v31  ;;  %v628_v0 = vld [vmem:[%s1251_s4] ss:$0 sm:$0xff] }
  0x82   : > { %691 = vmatpush1.bf16.msra.mxu0 %v690_v38  ;;  %713 = vmatprep.subr.bf16.mxu1 %v712_v6  ;;  %v310_v38 = vsub.s32 1, %v305_v35 }
  0x83   : > { %693 = vmatprep.subr.bf16.mxu0 %v692_v39  ;;  %v307_v39 = vrot.slane %v302_v37, %v306_v36 }
  0x84   : > { %v311_v40 = vrot.slane %v302_v37, %v310_v38 }
  0x85   : > { %715 = vmatpush3.bf16.msra.mxu1 %v714_v9 }
  0x86   : > { %695 = vmatpush1.bf16.msra.mxu0 %v694_v44  ;;  %717 = vmatprep.subr.bf16.mxu1 %v716_v13 }
  0x87   : > { %697 = vmatprep.subr.bf16.mxu0 %v696_v45 }
  0x89   : > { %719 = vmatpush3.bf16.msra.mxu1 %v718_v17 }
  0x8a   : > { %699 = vmatpush1.bf16.msra.mxu0 %v698_v48  ;;  %721 = vmatprep.subr.bf16.mxu1 %v720_v18 }
  0x8d   : > { %379 = vmatmul.mubr.f32.vlgmr.msra.gmra.mrb[0].mxu0 %v269_v49  ;;  %723 = vmatpush3.bf16.msra.mxu1 %v722_v23 }
  0x8e   : > { %725 = vmatprep.subr.bf16.mxu1 %v724_v24 }
  0x91   : > { %727 = vmatpush3.bf16.msra.mxu1 %v726_v29 }
  0x92   : > { %729 = vmatprep.subr.bf16.mxu1 %v728_v30 }
  0x95   : > { %731 = vmatpush3.bf16.msra.mxu1 %v730_v33 }
 0x160   : > { %v380_v41 = vpop.f32.mrb[0].mxu0 }
 0x161   : > { %v381_v42 = vadd.f32 %v380_v41, %v307_v39  ;;  %v382_v43 = vpop.f32.mrb[1].mxu0 }
 0x162   : > { %v383_v44 = vadd.f32 %v382_v43, %v311_v40 }
 0x163   : > { %v385_v45 = vmul.f32 %v381_v42, %v381_v42 }
 0x164   : > { %v386_v46 = vmul.f32 %v383_v44, %v383_v44 }
 0x165   : > { %v387_v47 = vmul.f32 %v385_v45, %v381_v42 }
 0x166   : > { %v388_v48 = vmul.f32 %v386_v46, %v383_v44 }
 0x167   : > { %v389_v49 = vmul.f32 0.044715, %v387_v47 }
 0x168   : > { %v390_v50 = vmul.f32 0.044715, %v388_v48 }
 0x169   : > { %v391_v51 = vadd.f32 %v389_v49, %v381_v42 }
 0x16a   : > { %v392_v52 = vadd.f32 %v390_v50, %v383_v44 }
 0x16b   : > { %v393_v53 = vmul.f32 0.7978846, %v391_v51 }
 0x16c   : > { %v394_v54 = vmul.f32 0.7978846, %v392_v52 }
 0x16d   : > { %804 = vtanh.f32 %v393_v53 }
 0x16e   : > { %806 = vtanh.f32 %v394_v54 }
 0x177   : > { %v805_v55 = vpop.eup %804 }
 0x178   : > { %v807_v56 = vpop.eup %806  ;;  %v397_v57 = vadd.f32 1.0, %v805_v55 }
 0x179   : > { %v398_v58 = vadd.f32 1.0, %v807_v56 }
 0x17a   : > { %v399_v59 = vmul.f32 0.5, %v397_v57 }
 0x17b   : > { %v400_v60 = vmul.f32 0.5, %v398_v58 }
 0x17c   : > { %v401_v62 = vmul.f32 %v399_v59, %v381_v42 }
 0x17d   : > { %v402_v61 = vmul.f32 %v400_v60, %v383_v44 }
 0x17f   : > { %506 = vmatprep.mubr.f32.mxu1 %v402_v61 }
 0x180   : > { %507 = vmatmul.mubr.f32.vlgmr.msra.gmra.mrb[0].mxu1 %v401_v62 }
 0x253   : > { %v665_v63 = vpop.f32.mrb[0].mxu1 }
 0x254   : > { %v666_v1 = vpop.f32.mrb[1].mxu1 }
 0x255   : > { %v667_v2 = vadd.f32 %v666_v1, %v665_v63 }
 0x257   : > { %v509_v3 = vadd.f32 %v667_v2, %v628_v0 }
 0x259   : > { %512 = vst [vmem:[%s268_s13] sm:$0xff] %v509_v3 }
 0x25a   : > { %907 = shalt.err (!%p904_p2)
}
 0x25b   : > { %s908_s14 = scalar_lea.hbm %s1203_s8, 128  ;;  %s912_s26 = scalar_lea.hbm %s1252_s5, 256 }
 0x25c   : > { %p909_p13 = scmp.ne.s32.totalorder %s1203_s8, %s908_s14  ;;  %p913_p4 = scmp.lt.u32.totalorder %s1203_s8, %s1252_s5 }
 0x25d   : > { %p914_p7 = scmp.lt.u32.totalorder %s912_s26, %s908_s14  ;;  %p916_p11 = scmp.lt.u32.totalorder %s908_s14, %s1203_s8 }
 0x25e   : > { %p910_p6 = pnand %p909_p13, %p1266_p0 }
 0x25f   : > { %p915_p8 = por %p914_p7, %p913_p4 }
 0x260   : > { %p911_p10 = pneg %p910_p6 }
 0x261   : > { %p917_p1 = por %p916_p11, %p915_p8 }
 0x263   : > { %p918_p3 = pnand %p917_p1, %p911_p10 }
 0x265   : > { %921 = shalt.err (!%p918_p3)
}
 0x266   : > { %742 = dma.vmem_to_hbm [thread:$0]  (%p1266_p0), %s1205_s7, 128, %s1203_s8, %s514_s9  }
 0x267 PF: > { %s539_s12 = sand.u32 1, %s952_s18   ;;  %p1267_p5 = scmp.ne.s32.totalorder %s1257_s25, 0 }
 0x268   : > { %p1268_p9 = scmp.ge.s32.totalorder %s964_s21, 2  ;;  %s540_s13 = scalar_lea.sflag [#allocation4], %s539_s12 }
 0x26a   : > { %p756_p12 = pnand %p1268_p9, %p1267_p5 }
 0x26c   : > { %947 = dma.done.wait (!%p756_p12), %s540_s13, 128  }
 0x26d   : > { %949 = vsyncadd (!%p756_p12), %s540_s13, 4294967168  ;;  %p19_p2 = scmp.ge.s32.totalorder %s1115_s16, 4   ;;  %s1269_s18 = smov %s956_s19 }
 0x26e   : > { %s1270_s19 = smov %s960_s20  ;;  %s1271_s20 = smov %s1124_s27 }
 0x26f   : > { %s1272_s21 = smov %s1115_s16  ;;  %21 = sbr.rel (!%p19_p2) target bundleno = 6 (0x6), region = 93 }
 0x276   :  { %545 = vsyncpa [#allocation3], 1 }
 0x277   :  { %547 = vsyncpa [#allocation3 + $0x1], 1 }
 0x278   :  { %548 = vsyncpa [#allocation6], 1 }
 0x279   :  { %549 = vsyncpa [#allocation4], 1 }
 0x27a   :  { %551 = vsyncpa [#allocation4 + $0x1], 1 }

</bundles_post_ra>
